<compile_context>
chip_gen: v7x
topology: tpu7x:2x2x1
jax: 0.10.0
libtpu: 0.0.40
codegen_flags: <defaults>
</compile_context>

<pallas_src>
import functools

import jax
import jax.numpy as jnp
from jax.experimental import pallas as pl
from jax.experimental.pallas import tpu as pltpu

HIDDEN = 64        # hp.hidden
MAX_TILE_B = 2048  # fits trivially in VMEM on v5e/v6e (128 MiB) and v7x (64 MiB)


def _round_up(x, m):
    return ((x + m - 1) // m) * m


def _supports_bf16_elementwise():
    # v6e / v7x have native bf16 VPU+EUP; v5e (and older) do not.
    try:
        kind = jax.devices()[0].device_kind.lower()
    except Exception:
        return False
    return not any(v in kind for v in ("v2", "v3", "v4", "v5"))


def critic_kernel(xT_ref, w1t_ref, b1t_ref, w2t_ref, b2t_ref, w3p_ref, b3_ref,
                  v_ref, *, compute_dtype, ew_dtype):
    # x tile arrives in its HBM dtype; cast in-kernel (free on the VPU) instead of
    # re-writing x in the wrapper.
    x_t = xT_ref[...].astype(compute_dtype)                       # (F, tile_b)

    # fc1: (H, F) @ (F, tile_b) -> (H, tile_b). MXU, f32 accumulation, f32 bias add.
    a1 = jnp.dot(w1t_ref[...], x_t,
                 preferred_element_type=jnp.float32) + b1t_ref[...]
    h1 = jnp.tanh(a1.astype(ew_dtype))                            # bf16 EUP on v6e/v7x, f32 on v5e

    # fc2: (H, H) @ (H, tile_b) -> (H, tile_b)
    a2 = jnp.dot(w2t_ref[...], h1.astype(compute_dtype),
                 preferred_element_type=jnp.float32) + b2t_ref[...]
    h2 = jnp.tanh(a2.astype(ew_dtype))

    # fc3 value head on the MXU: (8, H) @ (H, tile_b) -> (8, tile_b); row 0 is the real
    # fc3 weight row, rows 1..7 are zero padding (free under MXU M granularity).
    v8 = jnp.dot(w3p_ref[...], h2.astype(compute_dtype),
                 preferred_element_type=jnp.float32)
    # Lane-dense (1, tile_b) store; b3 is a scalar read from SMEM.
    v_ref[...] = (v8[0:1, :] + b3_ref[0, 0]).astype(v_ref.dtype)


def prepare_params(params, compute_dtype=jnp.bfloat16):
    """One-time weight prep (transpose + cast); per-call path then only touches x."""
    w1, b1, w2, b2, w3, b3 = params
    h = w1.shape[1]
    w1t = w1.T.astype(compute_dtype)                        # (H, F)
    w2t = w2.T.astype(compute_dtype)                        # (H, H)
    b1t = b1.reshape(h, 1).astype(jnp.float32)              # (H, 1): lane-broadcast bias
    b2t = b2.reshape(h, 1).astype(jnp.float32)
    w3p = jnp.zeros((8, h), compute_dtype).at[0, :].set(    # (8, H): row 0 real, rest zero
        w3.reshape(h).astype(compute_dtype))
    b3s = b3.reshape(1, 1).astype(jnp.float32)              # scalar bias -> SMEM
    return (w1t, b1t, w2t, b2t, w3p, b3s)


def critic_forward(x, prepared, *, tile_b=None, bf16_elementwise=None):
    w1t, b1t, w2t, b2t, w3p, b3s = prepared
    B, F = x.shape
    compute_dtype = w1t.dtype

    if bf16_elementwise is None:
        bf16_elementwise = _supports_bf16_elementwise()
    ew_dtype = (jnp.bfloat16
                if (bf16_elementwise and compute_dtype == jnp.bfloat16)
                else jnp.float32)

    # Batch tiling: multiples of 128 lanes; large tiles amortize per-step overhead but
    # prefer >= 2 tiles so the "parallel" batch axis can use both v7x TensorCores.
    if tile_b is None:
        tile_b = min(MAX_TILE_B, max(128, _round_up(pl.cdiv(B, 2), 128)))
    tile_b = _round_up(tile_b, 128)
    B_pad = _round_up(B, tile_b)
    num_tiles = B_pad // tile_b

    # Transposed input (F, B_pad): batch on the lane axis. Under jit this transpose+pad
    # fuses into one tiny op; no dtype cast / extra HBM pass over x here.
    xT = x.T
    if B_pad != B:
        xT = jnp.pad(xT, ((0, 0), (0, B_pad - B)))

    kernel = functools.partial(critic_kernel,
                               compute_dtype=compute_dtype, ew_dtype=ew_dtype)
    resident = lambda arr: pl.BlockSpec(arr.shape, lambda i: (0, 0))

    v_row = pl.pallas_call(
        kernel,
        out_shape=jax.ShapeDtypeStruct((1, B_pad), jnp.float32),
        grid=(num_tiles,),
        in_specs=[
            pl.BlockSpec((F, tile_b), lambda i: (0, i)),        # x^T batch tiles (pipelined)
            resident(w1t),                                      # weights/biases VMEM-resident
            resident(b1t),
            resident(w2t),
            resident(b2t),
            resident(w3p),
            pl.BlockSpec(memory_space=pltpu.MemorySpace.SMEM),  # b3 scalar in SMEM
        ],
        out_specs=pl.BlockSpec((1, tile_b), lambda i: (0, i)),  # lane-dense output row
        compiler_params=pltpu.CompilerParams(
            dimension_semantics=("parallel",),                  # megacore sharding on v7x
        ),
    )(xT, w1t, b1t, w2t, b2t, w3p, b3s)

    return v_row[0, :B].reshape(B, 1)


def init_params(key, num_inputs, hidden=HIDDEN):
    # Deterministic synthetic init mirroring the PyTorch module's parameter shapes.
    k1, k2, k3, k4, k5, k6 = jax.random.split(key, 6)

    def linear_init(kw, kb, fan_in, fan_out):
        bound = 1.0 / jnp.sqrt(fan_in)
        w = jax.random.uniform(kw, (fan_in, fan_out), jnp.float32, -bound, bound)
        b = jax.random.uniform(kb, (1, fan_out), jnp.float32, -bound, bound)
        return w, b

    w1, b1 = linear_init(k1, k2, num_inputs, hidden)
    w2, b2 = linear_init(k3, k4, hidden, hidden)
    w3, b3 = linear_init(k5, k6, hidden, 1)
    w3 = w3 * 0.1          # self.fc3.weight.data.mul_(0.1)
    b3 = b3 * 0.0          # self.fc3.bias.data.mul_(0.0)
    return (w1, b1, w2, b2, w3, b3)


def critic_reference(x, params):
    w1, b1, w2, b2, w3, b3 = params
    h1 = jnp.tanh(jnp.dot(x, w1, preferred_element_type=jnp.float32) + b1)
    h2 = jnp.tanh(jnp.dot(h1, w2, preferred_element_type=jnp.float32) + b2)
    return jnp.dot(h2, w3, preferred_element_type=jnp.float32) + b3


if __name__ == "__main__":
    key = jax.random.PRNGKey(0)
    k_x, k_p = jax.random.split(key)

    batch = 200            # not a multiple of the tile -> exercises batch padding; 2 grid tiles
    num_inputs = 17        # MuJoCo-like (odd) observation dim
    tile_b = 128

    x = jax.random.normal(k_x, (batch, num_inputs), jnp.float32)
    params = init_params(k_p, num_inputs)
    ref = critic_reference(x, params)

    # 1) exact-semantics f32 path vs the module reference
    prep_f32 = prepare_params(params, compute_dtype=jnp.float32)
    v_f32 = jax.block_until_ready(critic_forward(x, prep_f32, tile_b=tile_b))
    assert v_f32.shape == (batch, 1)
    assert jnp.allclose(v_f32, ref, atol=1e-3, rtol=1e-3)

    # 2) optimized bf16 path (elementwise dtype auto-selected per TPU generation), under jit
    prep_bf16 = prepare_params(params, compute_dtype=jnp.bfloat16)
    fwd = jax.jit(functools.partial(critic_forward, tile_b=tile_b))
    v_bf16 = jax.block_until_ready(fwd(x, prep_bf16))
    assert v_bf16.shape == (batch, 1)
    assert jnp.allclose(v_bf16, ref, atol=5e-2, rtol=0.0)

    # 3) v5e-style path (bf16 matmuls, f32 bias/tanh) also compiles and matches
    v_mixed = jax.block_until_ready(
        critic_forward(x, prep_bf16, tile_b=tile_b, bf16_elementwise=False))
    assert jnp.allclose(v_mixed, ref, atol=5e-2, rtol=0.0)

    print("KERNEL_OK")
</pallas_src>

<mosaic_0001>
module attributes {stable_mosaic.version = 11 : i64} {
  func.func @critic_kernel(%arg0: i32, %arg1: memref<17x128xf32, #tpu.memory_space<vmem>>, %arg2: memref<64x17xf32, #tpu.memory_space<vmem>>, %arg3: memref<64x1xf32, #tpu.memory_space<vmem>>, %arg4: memref<64x64xf32, #tpu.memory_space<vmem>>, %arg5: memref<64x1xf32, #tpu.memory_space<vmem>>, %arg6: memref<8x64xf32, #tpu.memory_space<vmem>>, %arg7: memref<1x1xf32, #tpu.memory_space<smem>>, %arg8: memref<1x128xf32, #tpu.memory_space<vmem>>) attributes {dimension_semantics = [#tpu.dimension_semantics<parallel>], iteration_bounds = array<i64: 2>, scalar_prefetch = 0 : i64, scratch_operands = 0 : i64, tpu.core_type = #tpu.core_type<tc>, window_params = [{transform_indices = @transform_0, window_bounds = array<i64: 17, 128>}, {pipeline_mode = #tpu.pipeline_mode<synchronous>, transform_indices = @transform_1, window_bounds = array<i64: 64, 17>}, {pipeline_mode = #tpu.pipeline_mode<synchronous>, transform_indices = @transform_2, window_bounds = array<i64: 64, 1>}, {pipeline_mode = #tpu.pipeline_mode<synchronous>, transform_indices = @transform_3, window_bounds = array<i64: 64, 64>}, {pipeline_mode = #tpu.pipeline_mode<synchronous>, transform_indices = @transform_4, window_bounds = array<i64: 64, 1>}, {pipeline_mode = #tpu.pipeline_mode<synchronous>, transform_indices = @transform_5, window_bounds = array<i64: 8, 64>}, {transform_indices = @transform_6, window_bounds = array<i64: 1, 1>}, {transform_indices = @transform_7, window_bounds = array<i64: 1, 128>}]} {
    %c0 = arith.constant 0 : index
    %c0_0 = arith.constant 0 : index
    %0 = vector.load %arg1[%c0, %c0_0] : memref<17x128xf32, #tpu.memory_space<vmem>>, vector<17x128xf32>
    %c0_1 = arith.constant 0 : index
    %c0_2 = arith.constant 0 : index
    %1 = vector.load %arg2[%c0_1, %c0_2] : memref<64x17xf32, #tpu.memory_space<vmem>>, vector<64x17xf32>
    %cst = arith.constant dense<0.000000e+00> : vector<64x128xf32>
    %2 = tpu.matmul %1, %0, %cst {dimension_numbers = #tpu.dot_dimension_numbers<[1], [0], [0], [1], [0, 0, 1, 1], [], []>} : vector<64x17xf32>, vector<17x128xf32>, vector<64x128xf32> -> vector<64x128xf32>
    %c0_3 = arith.constant 0 : index
    %c0_4 = arith.constant 0 : index
    %3 = vector.load %arg3[%c0_3, %c0_4] : memref<64x1xf32, #tpu.memory_space<vmem>>, vector<64x1xf32>
    %4 = vector.broadcast %3 : vector<64x1xf32> to vector<64x128xf32>
    %5 = arith.addf %2, %4 : vector<64x128xf32>
    %6 = math.tanh %5 : vector<64x128xf32>
    %c0_5 = arith.constant 0 : index
    %c0_6 = arith.constant 0 : index
    %7 = vector.load %arg4[%c0_5, %c0_6] : memref<64x64xf32, #tpu.memory_space<vmem>>, vector<64x64xf32>
    %cst_7 = arith.constant dense<0.000000e+00> : vector<64x128xf32>
    %8 = tpu.matmul %7, %6, %cst_7 {dimension_numbers = #tpu.dot_dimension_numbers<[1], [0], [0], [1], [0, 0, 1, 1], [], []>} : vector<64x64xf32>, vector<64x128xf32>, vector<64x128xf32> -> vector<64x128xf32>
    %c0_8 = arith.constant 0 : index
    %c0_9 = arith.constant 0 : index
    %9 = vector.load %arg5[%c0_8, %c0_9] : memref<64x1xf32, #tpu.memory_space<vmem>>, vector<64x1xf32>
    %10 = vector.broadcast %9 : vector<64x1xf32> to vector<64x128xf32>
    %11 = arith.addf %8, %10 : vector<64x128xf32>
    %12 = math.tanh %11 : vector<64x128xf32>
    %c0_10 = arith.constant 0 : index
    %c0_11 = arith.constant 0 : index
    %13 = vector.load %arg6[%c0_10, %c0_11] : memref<8x64xf32, #tpu.memory_space<vmem>>, vector<8x64xf32>
    %cst_12 = arith.constant dense<0.000000e+00> : vector<8x128xf32>
    %14 = tpu.matmul %13, %12, %cst_12 {dimension_numbers = #tpu.dot_dimension_numbers<[1], [0], [0], [1], [0, 0, 1, 1], [], []>} : vector<8x64xf32>, vector<64x128xf32>, vector<8x128xf32> -> vector<8x128xf32>
    %15 = vector.extract_strided_slice %14 {offsets = [0, 0], sizes = [1, 128], strides = [1, 1]} : vector<8x128xf32> to vector<1x128xf32>
    %c0_13 = arith.constant 0 : index
    %c0_14 = arith.constant 0 : index
    %16 = memref.load %arg7[%c0_13, %c0_14] : memref<1x1xf32, #tpu.memory_space<smem>>
    %17 = vector.broadcast %16 : f32 to vector<1x128xf32>
    %18 = arith.addf %15, %17 : vector<1x128xf32>
    %c0_15 = arith.constant 0 : index
    %c0_16 = arith.constant 0 : index
    %19 = vector.load %arg8[%c0_15, %c0_16] : memref<1x128xf32, #tpu.memory_space<vmem>>, vector<1x128xf32>
    tpu.vector_store %arg8[%c0_15, %c0_16], %18 {strides = array<i32>} : memref<1x128xf32, #tpu.memory_space<vmem>>, vector<1x128xf32>,
    return
  }
  func.func @transform_0(%arg0: i32) -> (i32, i32) {
    %c0_i32 = arith.constant 0 : i32
    %c0_i32_0 = arith.constant 0 : i32
    return %c0_i32, %arg0 : i32, i32
  }
  func.func @transform_1(%arg0: i32) -> (i32, i32) {
    %c0_i32 = arith.constant 0 : i32
    %c0_i32_0 = arith.constant 0 : i32
    %c0_i32_1 = arith.constant 0 : i32
    return %c0_i32, %c0_i32_0 : i32, i32
  }
  func.func @transform_2(%arg0: i32) -> (i32, i32) {
    %c0_i32 = arith.constant 0 : i32
    %c0_i32_0 = arith.constant 0 : i32
    %c0_i32_1 = arith.constant 0 : i32
    return %c0_i32, %c0_i32_0 : i32, i32
  }
  func.func @transform_3(%arg0: i32) -> (i32, i32) {
    %c0_i32 = arith.constant 0 : i32
    %c0_i32_0 = arith.constant 0 : i32
    %c0_i32_1 = arith.constant 0 : i32
    return %c0_i32, %c0_i32_0 : i32, i32
  }
  func.func @transform_4(%arg0: i32) -> (i32, i32) {
    %c0_i32 = arith.constant 0 : i32
    %c0_i32_0 = arith.constant 0 : i32
    %c0_i32_1 = arith.constant 0 : i32
    return %c0_i32, %c0_i32_0 : i32, i32
  }
  func.func @transform_5(%arg0: i32) -> (i32, i32) {
    %c0_i32 = arith.constant 0 : i32
    %c0_i32_0 = arith.constant 0 : i32
    %c0_i32_1 = arith.constant 0 : i32
    return %c0_i32, %c0_i32_0 : i32, i32
  }
  func.func @transform_6(%arg0: i32) -> (i32, i32) {
    %c0_i32 = arith.constant 0 : i32
    %c0_i32_0 = arith.constant 0 : i32
    %c0_i32_1 = arith.constant 0 : i32
    return %c0_i32, %c0_i32_0 : i32, i32
  }
  func.func @transform_7(%arg0: i32) -> (i32, i32) {
    %c0_i32 = arith.constant 0 : i32
    %c0_i32_0 = arith.constant 0 : i32
    return %c0_i32, %arg0 : i32, i32
  }
}

</mosaic_0001>

<bundles_post_ra>
// kernel: tpu_custom_call.1
= control target key start
LH: loop header
LB: loop body
LE: loop exit
PB: predicated region body
PF: predicated region fallthrough
CT: control target
= control target key end

     0   :  { %s1442_s0 = inlined_call_operand.vmem [shape: f32[17,256], index: 0, kind: input, shape index: {}]   ;;  %s1443_s1 = inlined_call_operand.vmem [shape: f32[64,17], index: 1, kind: input, shape index: {}]   ;;  %s1444_s2 = inlined_call_operand.vmem [shape: f32[64,1], index: 2, kind: input, shape index: {}]   ;;  %s1445_s3 = inlined_call_operand.vmem [shape: f32[64,64], index: 3, kind: input, shape index: {}]   ;;  %s1446_s4 = inlined_call_operand.vmem [shape: f32[64,1], index: 4, kind: input, shape index: {}]   ;;  %s1447_s5 = inlined_call_operand.vmem [shape: f32[8,64], index: 5, kind: input, shape index: {}]   ;;  %s1448_s6 = inlined_call_operand.<no memory space> [shape: f32[1,1], index: 6, kind: input, shape index: {}]   ;;  %s1449_s7 = inlined_call_operand.hbm [shape: f32[1,256], index: 7, kind: output, shape index: {}]  }
   0x1   :  { %12 = sst [smem:[#allocation2]] %s1448_s6 }
   0x2   :  { %13 = vsyncpa [#allocation5], 0 }
   0x3   :  { %15 = vsyncpa [#allocation5 + $0x1], 0  ;;  %s1216_s26 = smov 0   ;;  %s1218_s27 = smov 0  }
   0x4   :  { %s1220_s28 = smov 0   ;;  %s1222_s29 = smov 0  }
   0x5 LB: > { %s865_s6 = sadd.s32 4294967295, %s1166_s29   ;;  %s866_s30 = sadd.s32 4294967294, %s1166_s29   ;;  %s1166_s29 = sphi %s1222_s29, %s1455_s29   ;;  %s1162_s28 = sphi %s1220_s28, %s1454_s28   ;;  %s1158_s27 = sphi %s1218_s27, %s1453_s27   ;;  %s1154_s26 = sphi %s1216_s26, %s1452_s26  }
   0x6   : > { %s1239_s8 = sadd.s32 1, %s1166_s29   ;;  %s28_s9 = sadd.s32 1, %s1162_s28 }
   0x7   : > { %s25_s10 = ssub.s32 %s1166_s29, %s1239_s8  ;;  %p35_p0 = scmp.ne.s32.totalorder %s1162_s28, %s1158_s27 }
   0x8   : > { %p26_p1 = scmp.eq.s32.totalorder %s25_s10, 0  ;;  %p36_p2 = scmp.eq.s32.totalorder %s1166_s29, 0 }
   0x9   : > { %p191_p3 = scmp.eq.s32.totalorder %s865_s6, 1  ;;  %p196_p4 = scmp.ne.s32.totalorder %s1158_s27, %s1154_s26 }
   0xa   : > { %s1252_s11 = scalar_select %p26_p1, %s1162_s28, %s28_s9  }
   0xb   : > { %p37_p5 = por %p36_p2, %p35_p0  ;;  %p1254_p6 = por %p191_p3, %p35_p0 }
   0xc   : > { %p197_p7 = scmp.eq.s32.totalorder %s866_s30, 1  ;;  %p868_p9 = scmp.ge.s32.totalorder %s1166_s29, 2 }
   0xe   : > { %p1258_p8 = por %p197_p7, %p196_p4  ;;  %231 = sbr.rel (%p868_p9) target bundleno = 28 (0x1c), region = 40 }
  0x15   : > { %234 = sbr.rel (!%p37_p5) target bundleno = 28 (0x1c), region = 44  ;;  %s236_s14 = sand.u32 (%p37_p5), 1, %s1162_s28  }
  0x16   : > { %s869_s15 = sshll.u32 (%p37_p5), %s1166_s29, 3  ;;  %s1025_s16 = smul.u32 (%p37_p5), 24, %s236_s14 }
  0x17   : > { %s240_s19 = scalar_lea.vmem (%p37_p5), %s1442_s0, %s869_s15 }
  0x18   : > { %v272_v0 = vld [vmem:[%s240_s19] sm:$0xff] (%p37_p5)  ;;  %v274_v1 = vld [vmem:[%s240_s19 + $0x10] sm:$0xff] (%p37_p5)  ;;  %s238_s20 = scalar_lea.vmem (%p37_p5), [#allocation3], %s1025_s16 }
  0x19   : > { %v276_v2 = vld [vmem:[%s240_s19 + $0x20] sm:$0xff] (%p37_p5)  ;;  %273 = vst [vmem:[%s238_s20] sm:$0xff] (%p37_p5), %v272_v0  ;;  %275 = vst [vmem:[%s238_s20 + $0x8] sm:$0xff] (%p37_p5), %v274_v1 }
  0x1a   : > { %277 = vst [vmem:[%s238_s20 + $0x10] sm:$0xff] (%p37_p5), %v276_v2 }
  0x1c PF: > { %p870_p10 = scmp.ge.s32.totalorder %s1166_s29, 1  ;;  %p282_p11 = scmp.lt.s32.totalorder %s1166_s29, 3 }
  0x1e   : > { %p283_p12 = pnand %p870_p10, %p282_p11 }
  0x1f   : > { %s1273_s21 = sand.u32 (!%p283_p12), 1, %s1158_s27   ;;  %v322_v3 = vld [vmem:[%s1443_s1] sm:$0xff] (!%p283_p12)  ;;  %vm378_vm0 = vcmask (!%p283_p12), 138240   ;;  %v1168_v4 = vmov (!%p283_p12), 0   ;;  %v332_v6 = vld [vmem:[%s1444_s2 + $0x10] sm:$0xff] (!%p283_p12)  ;;  %v331_v9 = vld [vmem:[%s1444_s2 + $0x8] sm:$0xff] (!%p283_p12) }
  0x20   : > { %286 = sbr.rel (%p283_p12) target bundleno = 760 (0x2f8), region = 82  ;;  %934 = vmatprep.mubr.msk.f32.mxu0 (!%p283_p12), %vm378_vm0, %v322_v3  ;;  %1070 = vset.pattern.permute.xlu0 (!%p283_p12), %v1168_v4  ;;  %v330_v5 = vld [vmem:[%s1444_s2] sm:$0xff] (!%p283_p12)  ;;  %v333_v11 = vld [vmem:[%s1444_s2 + $0x18] sm:$0xff] (!%p283_p12)  ;;  %vm403_vm1 = vcmask (!%p283_p12), 1040384   ;;  %v335_v14 = vld [vmem:[%s1444_s2 + $0x28] sm:$0xff] (!%p283_p12)  ;;  %vm576_vm2 = vcmask (!%p283_p12), 523264  }
  0x21   : > { %s1026_s24 = smul.u32 (!%p283_p12), 24, %s1273_s21  ;;  %1071 = vset.pattern.permute.xlu1 (!%p283_p12), %v1168_v4  ;;  %340 = vperm.xlu0 (!%p283_p12), %1070, %v330_v5   ;;  %v334_v13 = vld [vmem:[%s1444_s2 + $0x20] sm:$0xff] (!%p283_p12)  ;;  %v323_v15 = vld [vmem:[%s1443_s1 + $0x8] sm:$0xff] (!%p283_p12)  ;;  %v324_v16 = vld [vmem:[%s1443_s1 + $0x10] sm:$0xff] (!%p283_p12)  ;;  %vm1170_vm3 = vmmov (!%p283_p12), 0   ;;  %s788_s19 = sld [smem:[#allocation2]] (!%p283_p12) }
  0x22   : > { %350 = vperm.xlu1 (!%p283_p12), %1071, %v332_v6   ;;  %v336_v17 = vld [vmem:[%s1444_s2 + $0x30] sm:$0xff] (!%p283_p12)  ;;  %v337_v18 = vld [vmem:[%s1444_s2 + $0x38] sm:$0xff] (!%p283_p12)  ;;  %v326_v20 = vld [vmem:[%s1443_s1 + $0x20] sm:$0xff] (!%p283_p12)  ;;  %s889_s20 = sshll.u32 (!%p283_p12), %s865_s6, 4  ;;  %s318_s22 = scalar_lea.vmem (!%p283_p12), [#allocation4], %s1273_s21 }
  0x23   : > { %s291_s14 = scalar_lea.vmem (!%p283_p12), [#allocation3], %s1026_s24  ;;  %v325_v19 = vld [vmem:[%s1443_s1 + $0x18] sm:$0xff] (!%p283_p12)  ;;  %v528_v21 = vld [vmem:[%s1446_s4] sm:$0xff] (!%p283_p12)  ;;  %v529_v22 = vld [vmem:[%s1446_s4 + $0x8] sm:$0xff] (!%p283_p12)  ;;  %s805_s23 = sshll.u32 (!%p283_p12), %s318_s22, 4  ;;  %s1400_s23 = int_to_ptr.vmem [resolvable:$true] %s805_s23 }
  0x24   : > { %v319_v7 = vld [vmem:[%s291_s14] sm:$0xff] (!%p283_p12)  ;;  %v320_v8 = vld [vmem:[%s291_s14 + $0x8] sm:$0xff] (!%p283_p12)  ;;  %v321_v12 = vld [vmem:[%s291_s14 + $0x10] sm:$0x1] (!%p283_p12)  ;;  %s1398_s30 = scalar_lea.hbm (!%p283_p12), %s1449_s7, %s889_s20  ;;  %s793_s9 = scalar_lea.sflag (!%p283_p12), [#allocation5], %s1273_s21 }
  0x25   : > { %v993_v10 = vpack.c.bf16 (!%p283_p12), %v320_v8, %v319_v7  ;;  %345 = vperm.xlu0 (!%p283_p12), %1070, %v331_v9   ;;  %v327_v23 = vld [vmem:[%s1443_s1 + $0x28] sm:$0xff] (!%p283_p12)  ;;  %v328_v24 = vld [vmem:[%s1443_s1 + $0x30] sm:$0xff] (!%p283_p12)  ;;  %v531_v26 = vld [vmem:[%s1446_s4 + $0x18] sm:$0xff] (!%p283_p12)  ;;  %s1104_s10 = scalar_lea.vmem (!%p283_p12), %s1400_s23, 16  ;;  %s1172_s6 = smov (!%p283_p12), [#allocation4]  }
  0x26   : > { %355 = vperm.xlu1 (!%p283_p12), %1071, %v333_v11   ;;  %v530_v25 = vld [vmem:[%s1446_s4 + $0x10] sm:$0xff] (!%p283_p12)  ;;  %v329_v27 = vld [vmem:[%s1443_s1 + $0x38] sm:$0xff] (!%p283_p12)  ;;  %v532_v28 = vld [vmem:[%s1446_s4 + $0x20] sm:$0xff] (!%p283_p12)  ;;  %p1105_p13 = scmp.ne.s32.totalorder (!%p283_p12), %s1400_s23, %s1104_s10  ;;  %s1108_s14 = sshll.u32 (!%p283_p12), %s1172_s6, 4  ;;  %s1109_s14 = int_to_ptr.vmem [resolvable:$false] %s1108_s14 }
  0x27   : > { %994 = vmatprep.subr.bf16.mxu0 %v993_v10  ;;  %v533_v29 = vld [vmem:[%s1446_s4 + $0x28] sm:$0xff]  ;;  %v534_v30 = vld [vmem:[%s1446_s4 + $0x30] sm:$0xff]  ;;  %v535_v31 = vld [vmem:[%s1446_s4 + $0x38] sm:$0xff]  ;;  %s1110_s15 = scalar_lea.vmem %s1109_s14, 32  ;;  %p1111_p2 = scmp.lt.s32.totalorder %s1400_s23, %s1109_s14 }
  0x28   : > { %996 = vmatpush3.bf16.msra.mxu0 %v993_v10  ;;  %v520_v32 = vld [vmem:[%s1445_s3] sm:$0xff]  ;;  %v521_v5 = vld [vmem:[%s1445_s3 + $0x8] sm:$0xff]  ;;  %v522_v6 = vld [vmem:[%s1445_s3 + $0x10] sm:$0xff]  ;;  %p1106_p0 = pnand %p1105_p13, %p1254_p6  ;;  %p1112_p3 = scmp.lt.s32.totalorder %s1110_s15, %s1104_s10 }
  0x29   : > { %932 = vmatprep.subr.msk.mxu0 %vm403_vm1, %v321_v12  ;;  %360 = vperm.xlu0 %1070, %v334_v13   ;;  %v523_v7 = vld [vmem:[%s1445_s3 + $0x18] sm:$0xff]  ;;  %v524_v8 = vld [vmem:[%s1445_s3 + $0x20] sm:$0xff]  ;;  %v525_v9 = vld [vmem:[%s1445_s3 + $0x28] sm:$0xff]  ;;  %v1171_v13 = vmov 0.0  }
  0x2a   : > { %365 = vperm.xlu1 %1071, %v335_v14   ;;  %962 = vmatprep.mubr.msk.f32.mxu1 %vm576_vm2, %v520_v32  ;;  %v526_v10 = vld [vmem:[%s1445_s3 + $0x30] sm:$0xff]  ;;  %v527_v11 = vld [vmem:[%s1445_s3 + $0x38] sm:$0xff]  ;;  %p1107_p1 = pneg %p1106_p0  ;;  %p1113_p4 = por %p1112_p3, %p1111_p2 }
  0x2c   : > { %933 = vmatpush3.msk.msra.mxu0 %vm403_vm1, %v321_v12  ;;  %v1169_v12 = vmov 0.0|0.0   ;;  %p1114_p5 = pnand %p1113_p4, %p1107_p1 }
  0x2d   : > { %935 = vmatmul.mubr.msk.f32.vlgmr.msra.gmra.mrb[0].mxu0 %vm378_vm0, %v323_v15  ;;  %370 = vperm.xlu0 %1070, %v336_v17  }
  0x2e   : > { %937 = vmatprep.mubr.msk.f32.mxu0 %vm378_vm0, %v324_v16  ;;  %375 = vperm.xlu1 %1071, %v337_v18  }
  0x2f   : > { %1013 = vmatprep.subr.bf16.mxu0 %v1169_v12 }
  0x31   : > { %938 = vmatmul.mubr.msk.f32.gmra.mrb[2].mxu0 %vm378_vm0, %v325_v19  ;;  %538 = vperm.xlu0 %1070, %v528_v21  }
  0x32   : > { %940 = vmatprep.mubr.msk.f32.mxu0 %vm378_vm0, %v326_v20  ;;  %543 = vperm.xlu1 %1071, %v529_v22  }
  0x35   : > { %941 = vmatmul.mubr.msk.f32.gmra.mrb[4].mxu0 %vm378_vm0, %v327_v23  ;;  %548 = vperm.xlu0 %1070, %v530_v25  }
  0x36   : > { %943 = vmatprep.mubr.msk.f32.mxu0 %vm378_vm0, %v328_v24  ;;  %553 = vperm.xlu1 %1071, %v531_v26  }
  0x39   : > { %944 = vmatmul.mubr.msk.f32.gmra.mrb[6].mxu0 %vm378_vm0, %v329_v27  ;;  %558 = vperm.xlu0 %1070, %v532_v28  }
  0x3a   : > { %563 = vperm.xlu1 %1071, %v533_v29   ;;  %990 = vmatprep.mubr.msk.f32.mxu0 %vm1170_vm3, %v1171_v13 }
  0x3d   : > { %568 = vperm.xlu0 %1070, %v534_v30  }
  0x3e   : > { %573 = vperm.xlu1 %1071, %v535_v31  }
  0xa0   : > { %v341_v33 = vpop.permute.xlu0 %340 }
  0xa1   : > { %v351_v34 = vpop.permute.xlu1 %350 }
  0xa4   : > { %v346_v35 = vpop.permute.xlu0 %345 }
  0xa5   : > { %v356_v36 = vpop.permute.xlu1 %355 }
  0xa8   : > { %v361_v46 = vpop.permute.xlu0 %360 }
  0xa9   : > { %v366_v44 = vpop.permute.xlu1 %365 }
  0xac   : > { %v371_v54 = vpop.permute.xlu0 %370 }
  0xad   : > { %v376_v51 = vpop.permute.xlu1 %375 }
  0xb0   : > { %v539_v15 = vpop.permute.xlu0 %538 }
  0xb1   : > { %v544_v14 = vpop.permute.xlu1 %543 }
  0xb4   : > { %v549_v18 = vpop.permute.xlu0 %548 }
  0xb5   : > { %v554_v16 = vpop.permute.xlu1 %553 }
  0xb8   : > { %v559_v27 = vpop.permute.xlu0 %558 }
  0xb9   : > { %v564_v25 = vpop.permute.xlu1 %563 }
  0xbd   : > { %v574_v32 = vpop.permute.xlu1 %573 }
 0x100   : > { %v936_v37 = vpop.f32.mrb[0].mxu0 }
 0x101   : > { %v479_v38 = vadd.f32 %v936_v37, %v346_v35  ;;  %v473_v39 = vpop.f32.mrb[1].mxu0  ;;  %v569_v35 = vpop.permute.xlu0 %568 }
 0x102   : > { %v474_v40 = vadd.f32 %v473_v39, %v341_v33 }
 0x103   : > { %1072 = vtanh.f32 %v479_v38 }
 0x104   : > { %1074 = vtanh.f32 %v474_v40  ;;  %v939_v41 = vpop.f32.mrb[2].mxu0 }
 0x105   : > { %v489_v42 = vadd.f32 %v939_v41, %v356_v36  ;;  %v483_v43 = vpop.f32.mrb[3].mxu0 }
 0x106   : > { %v484_v45 = vadd.f32 %v483_v43, %v351_v34 }
 0x107   : > { %1076 = vtanh.f32 %v489_v42 }
 0x108   : > { %1078 = vtanh.f32 %v484_v45  ;;  %v942_v47 = vpop.f32.mrb[4].mxu0 }
 0x109   : > { %v499_v48 = vadd.f32 %v942_v47, %v366_v44  ;;  %v493_v49 = vpop.f32.mrb[5].mxu0 }
 0x10a   : > { %v494_v50 = vadd.f32 %v493_v49, %v361_v46 }
 0x10b   : > { %1080 = vtanh.f32 %v499_v48 }
 0x10c   : > { %1082 = vtanh.f32 %v494_v50  ;;  %v945_v52 = vpop.f32.mrb[6].mxu0  ;;  %v714_v50 = vld [vmem:[%s1447_s5] sm:$0xff] }
 0x10d   : > { %v1073_v53 = vpop.eup %1072  ;;  %v509_v55 = vadd.f32 %v945_v52, %v376_v51  ;;  %v503_v56 = vpop.f32.mrb[7].mxu0  ;;  %v789_v51 = vstv %s788_s19 }
 0x10e   : > { %v1075_v57 = vpop.eup %1074  ;;  %v504_v58 = vadd.f32 %v503_v56, %v371_v54 }
 0x10f   : > { %1084 = vtanh.f32 %v509_v55  ;;  %v997_v59 = vpack.c.bf16 %v1073_v53, %v1075_v57 }
 0x110   : > { %1086 = vtanh.f32 %v504_v58 }
 0x111   : > { %v1077_v60 = vpop.eup %1076  ;;  %998 = vmatprep.subr.bf16.mxu1 %v997_v59 }
 0x112   : > { %v1079_v61 = vpop.eup %1078  ;;  %1000 = vmatpush3.bf16.msra.mxu1 %v997_v59 }
 0x113   : > { %v1001_v62 = vpack.c.bf16 %v1077_v60, %v1079_v61 }
 0x115   : > { %v1081_v63 = vpop.eup %1080  ;;  %1002 = vmatprep.subr.bf16.mxu1 %v1001_v62 }
 0x116   : > { %v1083_v0 = vpop.eup %1082  ;;  %1004 = vmatpush3.bf16.msra.mxu1 %v1001_v62 }
 0x117   : > { %v1005_v1 = vpack.c.bf16 %v1081_v63, %v1083_v0 }
 0x119   : > { %v1085_v2 = vpop.eup %1084  ;;  %1006 = vmatprep.subr.bf16.mxu1 %v1005_v1 }
 0x11a   : > { %v1087_v3 = vpop.eup %1086  ;;  %1008 = vmatpush3.bf16.msra.mxu1 %v1005_v1 }
 0x11b   : > { %v1009_v4 = vpack.c.bf16 %v1085_v2, %v1087_v3 }
 0x11d   : > { %1010 = vmatprep.subr.bf16.mxu1 %v1009_v4 }
 0x11e   : > { %1012 = vmatpush3.bf16.msra.mxu1 %v1009_v4 }
 0x121   : > { %963 = vmatmul.mubr.msk.f32.vlgmr.msra.gmra.mrb[0].mxu1 %vm576_vm2, %v521_v5 }
 0x122   : > { %965 = vmatprep.mubr.msk.f32.mxu1 %vm576_vm2, %v522_v6 }
 0x125   : > { %966 = vmatmul.mubr.msk.f32.gmra.mrb[2].mxu1 %vm576_vm2, %v523_v7 }
 0x126   : > { %968 = vmatprep.mubr.msk.f32.mxu1 %vm576_vm2, %v524_v8 }
 0x129   : > { %969 = vmatmul.mubr.msk.f32.gmra.mrb[4].mxu1 %vm576_vm2, %v525_v9 }
 0x12a   : > { %971 = vmatprep.mubr.msk.f32.mxu1 %vm576_vm2, %v526_v10 }
 0x12d   : > { %972 = vmatmul.mubr.msk.f32.gmra.mrb[6].mxu1 %vm576_vm2, %v527_v11 }
 0x1f4   : > { %v964_v17 = vpop.f32.mrb[0].mxu1 }
 0x1f5   : > { %v673_v19 = vadd.f32 %v964_v17, %v544_v14  ;;  %v667_v20 = vpop.f32.mrb[1].mxu1 }
 0x1f6   : > { %v668_v21 = vadd.f32 %v667_v20, %v539_v15 }
 0x1f7   : > { %1088 = vtanh.f32 %v673_v19 }
 0x1f8   : > { %1090 = vtanh.f32 %v668_v21  ;;  %v967_v22 = vpop.f32.mrb[2].mxu1 }
 0x1f9   : > { %v683_v23 = vadd.f32 %v967_v22, %v554_v16  ;;  %v677_v24 = vpop.f32.mrb[3].mxu1 }
 0x1fa   : > { %v678_v26 = vadd.f32 %v677_v24, %v549_v18 }
 0x1fb   : > { %1092 = vtanh.f32 %v683_v23 }
 0x1fc   : > { %1094 = vtanh.f32 %v678_v26  ;;  %v970_v28 = vpop.f32.mrb[4].mxu1 }
 0x1fd   : > { %v693_v29 = vadd.f32 %v970_v28, %v564_v25  ;;  %v687_v30 = vpop.f32.mrb[5].mxu1 }
 0x1fe   : > { %v688_v31 = vadd.f32 %v687_v30, %v559_v27 }
 0x1ff   : > { %1096 = vtanh.f32 %v693_v29 }
 0x200   : > { %1098 = vtanh.f32 %v688_v31  ;;  %v973_v33 = vpop.f32.mrb[6].mxu1 }
 0x201   : > { %v1089_v34 = vpop.eup %1088  ;;  %v703_v36 = vadd.f32 %v973_v33, %v574_v32  ;;  %v697_v37 = vpop.f32.mrb[7].mxu1 }
 0x202   : > { %v1091_v38 = vpop.eup %1090  ;;  %v698_v39 = vadd.f32 %v697_v37, %v569_v35 }
 0x203   : > { %1100 = vtanh.f32 %v703_v36  ;;  %v1014_v40 = vpack.c.bf16 %v1089_v34, %v1091_v38 }
 0x204   : > { %1102 = vtanh.f32 %v698_v39 }
 0x205   : > { %v1093_v41 = vpop.eup %1092  ;;  %1015 = vmatpush3.bf16.msra.mxu0 %v1014_v40 }
 0x206   : > { %v1095_v42 = vpop.eup %1094  ;;  %1016 = vmatprep.subr.bf16.mxu0 %v1169_v12 }
 0x207   : > { %v1017_v43 = vpack.c.bf16 %v1093_v41, %v1095_v42 }
 0x209   : > { %v1097_v44 = vpop.eup %1096  ;;  %1018 = vmatpush3.bf16.msra.mxu0 %v1017_v43 }
 0x20a   : > { %v1099_v45 = vpop.eup %1098  ;;  %1019 = vmatprep.subr.bf16.mxu0 %v1169_v12 }
 0x20b   : > { %v1020_v46 = vpack.c.bf16 %v1097_v44, %v1099_v45 }
 0x20d   : > { %v1101_v47 = vpop.eup %1100  ;;  %1021 = vmatpush3.bf16.msra.mxu0 %v1020_v46 }
 0x20e   : > { %v1103_v48 = vpop.eup %1102  ;;  %1022 = vmatprep.subr.bf16.mxu0 %v1169_v12 }
 0x20f   : > { %v1023_v49 = vpack.c.bf16 %v1101_v47, %v1103_v48 }
 0x211   : > { %1024 = vmatpush3.bf16.msra.mxu0 %v1023_v49 }
 0x214   : > { %991 = vmatmul.mubr.msk.f32.vlgmr.msra.gmra.mrb[8].mxu0 %vm576_vm2, %v714_v50 }
 0x2e7   : > { %v784_v52 = vpop.f32.mrb[8].mxu0 }
 0x2e8   : > { %v790_v53 = vadd.f32 %v789_v51, %v784_v52  ;;  %v992_v54 = vpop.f32.mrb[9].mxu0 }
 0x2ea   : > { %791 = vst [vmem:[%s318_s22] sm:$0x1] %v790_v53 }
 0x2eb   : > { %1117 = shalt.err (!%p1114_p5)
}
 0x2ec   : > { %s1118_s21 = scalar_lea.hbm %s1398_s30, 16  ;;  %s1122_s18 = scalar_lea.hbm %s1449_s7, 32 }
 0x2ed   : > { %p1119_p7 = scmp.ne.s32.totalorder %s1398_s30, %s1118_s21  ;;  %p1123_p12 = scmp.lt.u32.totalorder %s1398_s30, %s1449_s7 }
 0x2ee   : > { %p1124_p13 = scmp.lt.u32.totalorder %s1122_s18, %s1118_s21  ;;  %p1126_p1 = scmp.lt.u32.totalorder %s1118_s21, %s1398_s30 }
 0x2ef   : > { %p1120_p10 = pnand %p1119_p7, %p1254_p6 }
 0x2f0   : > { %p1125_p0 = por %p1124_p13, %p1123_p12 }
 0x2f1   : > { %p1121_p11 = pneg %p1120_p10 }
 0x2f2   : > { %p1127_p2 = por %p1126_p1, %p1125_p0 }
 0x2f4   : > { %p1128_p3 = pnand %p1127_p2, %p1121_p11 }
 0x2f6   : > { %1131 = shalt.err (!%p1128_p3)
}
 0x2f7   : > { %1027 = dma.vmem_to_hbm [thread:$0]  (%p1254_p6), %s1400_s23, 16, %s1398_s30, %s793_s9  }
 0x2f8 PF: > { %s817_s22 = sand.u32 1, %s1154_s26   ;;  %p1030_p4 = pnand %p868_p9, %p1258_p8 }
 0x2f9   : > { %s818_s24 = scalar_lea.sflag [#allocation5], %s817_s22 }
 0x2fa   : > { %1149 = dma.done.wait (!%p1030_p4), %s818_s24, 16  }
 0x2fb   : > { %1151 = vsyncadd (!%p1030_p4), %s818_s24, 4294967280  ;;  %p18_p5 = scmp.ge.s32.totalorder %s1239_s8, 4   ;;  %s1452_s26 = smov %s1158_s27 }
 0x2fc   : > { %s1453_s27 = smov %s1162_s28  ;;  %s1454_s28 = smov %s1252_s11 }
 0x2fd   : > { %s1455_s29 = smov %s1239_s8  ;;  %20 = sbr.rel (!%p18_p5) target bundleno = 5 (0x5), region = 126 }
 0x304   :  { %822 = vsyncpa [#allocation5], 1 }
 0x305   :  { %824 = vsyncpa [#allocation5 + $0x1], 1 }

</bundles_post_ra>
